<compile_context>
chip_gen: v6e
topology: v6e:2x2x1
jax: 0.10.0
libtpu: 0.0.40
codegen_flags: <defaults>
</compile_context>

<pallas_src>
import functools

import jax
import jax.numpy as jnp
from jax.experimental import pallas as pl
from jax.experimental.pallas import tpu as pltpu

LANE = 128       # TPU lane width — action dim padded to this for dense stores
SUBLANE = 8      # sublane alignment for batch tiles
_MAX_TILE_B = 1024


def _mlp_kernel(x_ref, w1_ref, b1_ref, w2_ref, b2_ref, w3_ref, b3_ref, o_ref):
    """Fused 3-layer MLP: relu -> relu -> tanh.

    bf16 matmul operands, f32 accumulation (preferred_element_type); bias-add,
    relu and tanh run in f32 on the VPU/EUP (v5e-safe).
    """
    x = x_ref[...].astype(jnp.bfloat16)                       # (tile_b, S)
    h1 = jnp.dot(x, w1_ref[...], preferred_element_type=jnp.float32) + b1_ref[...]
    h1 = jnp.maximum(h1, 0.0).astype(jnp.bfloat16)
    h2 = jnp.dot(h1, w2_ref[...], preferred_element_type=jnp.float32) + b2_ref[...]
    h2 = jnp.maximum(h2, 0.0).astype(jnp.bfloat16)
    y = jnp.dot(h2, w3_ref[...], preferred_element_type=jnp.float32) + b3_ref[...]
    o_ref[...] = jnp.tanh(y)                                   # f32, lane-dense


def _round_up(x, m):
    return ((x + m - 1) // m) * m


def _pick_tile_b(B):
    """Batch tile: 1 block for small batches, ~2 fat aligned tiles otherwise."""
    if B <= LANE:
        return B  # block == full array dim is always layout-legal
    half = _round_up(pl.cdiv(B, 2), SUBLANE)
    return min(half, _MAX_TILE_B)


def prepare_params(params):
    """One-time (outside jit) cast/pad of f32 params into the kernel layout."""
    w1, b1, w2, b2, w3, b3 = params
    A = w3.shape[1]
    A_pad = _round_up(A, LANE)
    w3p = jnp.pad(w3, ((0, 0), (0, A_pad - A)))
    b3p = jnp.pad(b3, ((0, 0), (0, A_pad - A)))
    return (w1.astype(jnp.bfloat16), b1.astype(jnp.float32),
            w2.astype(jnp.bfloat16), b2.astype(jnp.float32),
            w3p.astype(jnp.bfloat16), b3p.astype(jnp.float32))


@functools.partial(jax.jit, static_argnames=("action_size", "tile_b"))
def deterministic_policy_forward(state, prepared_params, *, action_size, tile_b=None):
    """Fused MLP forward; tiles the batch with a cdiv grid (no host-side pad)."""
    w1, b1, w2, b2, w3, b3 = prepared_params
    B, S = state.shape
    H1 = w1.shape[1]
    H2 = w2.shape[1]
    A_pad = w3.shape[1]

    if tile_b is None:
        tile_b = _pick_tile_b(B)
    grid = (pl.cdiv(B, tile_b),)

    flops = 2 * B * (S * H1 + H1 * H2 + H2 * A_pad)
    bytes_accessed = (
        B * S * 4                                   # state (f32 in)
        + (w1.size + w2.size + w3.size) * 2         # bf16 weights
        + (b1.size + b2.size + b3.size) * 4         # f32 biases
        + B * A_pad * 4                             # f32 output
    )

    out = pl.pallas_call(
        _mlp_kernel,
        out_shape=jax.ShapeDtypeStruct((B, A_pad), jnp.float32),
        grid_spec=pltpu.PrefetchScalarGridSpec(
            num_scalar_prefetch=0,
            grid=grid,
            in_specs=[
                # state: one batch tile per grid step (final tile may be partial)
                pl.BlockSpec((tile_b, S), lambda i: (i, 0)),
                # weights / biases: full arrays, resident (constant index_map)
                pl.BlockSpec((S, H1), lambda i: (0, 0)),
                pl.BlockSpec((1, H1), lambda i: (0, 0)),
                pl.BlockSpec((H1, H2), lambda i: (0, 0)),
                pl.BlockSpec((1, H2), lambda i: (0, 0)),
                pl.BlockSpec((H2, A_pad), lambda i: (0, 0)),
                pl.BlockSpec((1, A_pad), lambda i: (0, 0)),
            ],
            out_specs=pl.BlockSpec((tile_b, A_pad), lambda i: (i, 0)),
        ),
        compiler_params=pltpu.CompilerParams(
            dimension_semantics=("parallel",),  # shard batch tiles across TCs (v7x)
        ),
        cost_estimate=pl.CostEstimate(
            flops=flops,
            transcendentals=B * A_pad,
            bytes_accessed=bytes_accessed,
        ),
    )(state, w1, b1, w2, b2, w3, b3)

    # Only the tiny (B, action_size) column slice remains in the wrapper.
    return out[:, :action_size]


def init_params(key, state_size, action_size, layer1_size, layer2_size, init_w):
    """Deterministic init mirroring the PyTorch module's __init__ (f32, raw).

    PyTorch's hidden_init uses fan = weight.size(0) = out_features; biases keep
    nn.Linear's default uniform(-1/sqrt(in_features), 1/sqrt(in_features));
    linear3 uses uniform(-init_w, init_w). Weights are stored as
    (in_features, out_features) for the kernel's `x @ W` layout.
    """
    k = jax.random.split(key, 6)

    def u(kk, shape, lim):
        return jax.random.uniform(kk, shape, jnp.float32, -lim, lim)

    lim1 = 1.0 / jnp.sqrt(jnp.float32(layer1_size))   # hidden_init(linear1)
    lim2 = 1.0 / jnp.sqrt(jnp.float32(layer2_size))   # hidden_init(linear2)
    b1_lim = 1.0 / jnp.sqrt(jnp.float32(state_size))  # default bias init
    b2_lim = 1.0 / jnp.sqrt(jnp.float32(layer1_size))

    w1 = u(k[0], (state_size, layer1_size), lim1)
    b1 = u(k[1], (1, layer1_size), b1_lim)
    w2 = u(k[2], (layer1_size, layer2_size), lim2)
    b2 = u(k[3], (1, layer2_size), b2_lim)
    w3 = u(k[4], (layer2_size, action_size), init_w)
    b3 = u(k[5], (1, action_size), init_w)
    return (w1, b1, w2, b2, w3, b3)


def reference_forward(state, params):
    w1, b1, w2, b2, w3, b3 = params
    h1 = jax.nn.relu(state @ w1 + b1)
    h2 = jax.nn.relu(h1 @ w2 + b2)
    return jnp.tanh(h2 @ w3 + b3)


if __name__ == "__main__":
    state_size = 32
    action_size = 8
    layer1_size = 256   # p_fc1_units default
    layer2_size = 256   # p_fc2_units default
    init_w = 0.003      # p_init_w default

    key = jax.random.PRNGKey(0)
    k_state, k_params = jax.random.split(key)
    raw_params = init_params(k_params, state_size, action_size,
                             layer1_size, layer2_size, init_w)
    # One-time cast/pad (the per-call forward touches only prepared params).
    prep = jax.block_until_ready(prepare_params(raw_params))

    batch = 256
    state = jax.random.normal(k_state, (batch, state_size), jnp.float32)
    ref = reference_forward(state, raw_params)

    # Batched path: tile_b=128 -> grid=(2,), one fat tile per v7x TensorCore.
    out = jax.block_until_ready(
        deterministic_policy_forward(state, prep, action_size=action_size))
    assert out.shape == (batch, action_size)
    # bf16 matmul operands => loosened tolerance vs f32 reference.
    assert jnp.allclose(out, ref, atol=3e-2, rtol=3e-2), "mismatch vs JAX reference"

    # Small ragged batch: single full block (grid=1), no host-side padding.
    out_small = jax.block_until_ready(
        deterministic_policy_forward(state[:50], prep, action_size=action_size))
    assert out_small.shape == (50, action_size)
    assert jnp.allclose(out_small, ref[:50], atol=3e-2, rtol=3e-2), \
        "mismatch vs JAX reference (small batch)"

    # Batch that does not divide the tile: exercises the masked final tile.
    out_rag = jax.block_until_ready(
        deterministic_policy_forward(state[:200], prep, action_size=action_size))
    assert out_rag.shape == (200, action_size)
    assert jnp.allclose(out_rag, ref[:200], atol=3e-2, rtol=3e-2), \
        "mismatch vs JAX reference (partial batch tile)"

    # TODO(synk): `sample()` (step-counted exploration noise via np.random) is
    # host-side control flow, not part of the forward hot path; not implemented
    # in the kernel.
    print("KERNEL_OK")
</pallas_src>

<mosaic_0001>
module attributes {stable_mosaic.version = 11 : i64} {
  func.func @_mlp_kernel(%arg0: i32, %arg1: memref<128x32xf32, #tpu.memory_space<vmem>>, %arg2: memref<32x256xbf16, #tpu.memory_space<vmem>>, %arg3: memref<1x256xf32, #tpu.memory_space<vmem>>, %arg4: memref<256x256xbf16, #tpu.memory_space<vmem>>, %arg5: memref<1x256xf32, #tpu.memory_space<vmem>>, %arg6: memref<256x128xbf16, #tpu.memory_space<vmem>>, %arg7: memref<1x128xf32, #tpu.memory_space<vmem>>, %arg8: memref<128x128xf32, #tpu.memory_space<vmem>>) attributes {dimension_semantics = [#tpu.dimension_semantics<parallel>], iteration_bounds = array<i64: 2>, scalar_prefetch = 0 : i64, scratch_operands = 0 : i64, tpu.core_type = #tpu.core_type<tc>, window_params = [{transform_indices = @transform_0, window_bounds = array<i64: 128, 32>}, {pipeline_mode = #tpu.pipeline_mode<synchronous>, transform_indices = @transform_1, window_bounds = array<i64: 32, 256>}, {pipeline_mode = #tpu.pipeline_mode<synchronous>, transform_indices = @transform_2, window_bounds = array<i64: 1, 256>}, {pipeline_mode = #tpu.pipeline_mode<synchronous>, transform_indices = @transform_3, window_bounds = array<i64: 256, 256>}, {pipeline_mode = #tpu.pipeline_mode<synchronous>, transform_indices = @transform_4, window_bounds = array<i64: 1, 256>}, {pipeline_mode = #tpu.pipeline_mode<synchronous>, transform_indices = @transform_5, window_bounds = array<i64: 256, 128>}, {pipeline_mode = #tpu.pipeline_mode<synchronous>, transform_indices = @transform_6, window_bounds = array<i64: 1, 128>}, {transform_indices = @transform_7, window_bounds = array<i64: 128, 128>}]} {
    %c0 = arith.constant 0 : index
    %c0_0 = arith.constant 0 : index
    %0 = vector.load %arg1[%c0, %c0_0] : memref<128x32xf32, #tpu.memory_space<vmem>>, vector<128x32xf32>
    %1 = arith.truncf %0 : vector<128x32xf32> to vector<128x32xbf16>
    %c0_1 = arith.constant 0 : index
    %c0_2 = arith.constant 0 : index
    %2 = vector.load %arg2[%c0_1, %c0_2] : memref<32x256xbf16, #tpu.memory_space<vmem>>, vector<32x256xbf16>
    %cst = arith.constant dense<0.000000e+00> : vector<128x256xf32>
    %3 = tpu.matmul %1, %2, %cst {dimension_numbers = #tpu.dot_dimension_numbers<[1], [0], [0], [1], [0, 0, 1, 1], [], []>} : vector<128x32xbf16>, vector<32x256xbf16>, vector<128x256xf32> -> vector<128x256xf32>
    %c0_3 = arith.constant 0 : index
    %c0_4 = arith.constant 0 : index
    %4 = vector.load %arg3[%c0_3, %c0_4] : memref<1x256xf32, #tpu.memory_space<vmem>>, vector<1x256xf32>
    %5 = vector.broadcast %4 : vector<1x256xf32> to vector<128x256xf32>
    %6 = arith.addf %3, %5 : vector<128x256xf32>
    %cst_5 = arith.constant 0.000000e+00 : f32
    %7 = vector.broadcast %cst_5 : f32 to vector<128x256xf32>
    %8 = arith.maximumf %6, %7 : vector<128x256xf32>
    %9 = arith.truncf %8 : vector<128x256xf32> to vector<128x256xbf16>
    %c0_6 = arith.constant 0 : index
    %c0_7 = arith.constant 0 : index
    %10 = vector.load %arg4[%c0_6, %c0_7] : memref<256x256xbf16, #tpu.memory_space<vmem>>, vector<256x256xbf16>
    %cst_8 = arith.constant dense<0.000000e+00> : vector<128x256xf32>
    %11 = tpu.matmul %9, %10, %cst_8 {dimension_numbers = #tpu.dot_dimension_numbers<[1], [0], [0], [1], [0, 0, 1, 1], [], []>} : vector<128x256xbf16>, vector<256x256xbf16>, vector<128x256xf32> -> vector<128x256xf32>
    %c0_9 = arith.constant 0 : index
    %c0_10 = arith.constant 0 : index
    %12 = vector.load %arg5[%c0_9, %c0_10] : memref<1x256xf32, #tpu.memory_space<vmem>>, vector<1x256xf32>
    %13 = vector.broadcast %12 : vector<1x256xf32> to vector<128x256xf32>
    %14 = arith.addf %11, %13 : vector<128x256xf32>
    %cst_11 = arith.constant 0.000000e+00 : f32
    %15 = vector.broadcast %cst_11 : f32 to vector<128x256xf32>
    %16 = arith.maximumf %14, %15 : vector<128x256xf32>
    %17 = arith.truncf %16 : vector<128x256xf32> to vector<128x256xbf16>
    %c0_12 = arith.constant 0 : index
    %c0_13 = arith.constant 0 : index
    %18 = vector.load %arg6[%c0_12, %c0_13] : memref<256x128xbf16, #tpu.memory_space<vmem>>, vector<256x128xbf16>
    %cst_14 = arith.constant dense<0.000000e+00> : vector<128x128xf32>
    %19 = tpu.matmul %17, %18, %cst_14 {dimension_numbers = #tpu.dot_dimension_numbers<[1], [0], [0], [1], [0, 0, 1, 1], [], []>} : vector<128x256xbf16>, vector<256x128xbf16>, vector<128x128xf32> -> vector<128x128xf32>
    %c0_15 = arith.constant 0 : index
    %c0_16 = arith.constant 0 : index
    %20 = vector.load %arg7[%c0_15, %c0_16] : memref<1x128xf32, #tpu.memory_space<vmem>>, vector<1x128xf32>
    %21 = vector.broadcast %20 : vector<1x128xf32> to vector<128x128xf32>
    %22 = arith.addf %19, %21 : vector<128x128xf32>
    %23 = math.tanh %22 : vector<128x128xf32>
    %c0_17 = arith.constant 0 : index
    %c0_18 = arith.constant 0 : index
    %24 = vector.load %arg8[%c0_17, %c0_18] : memref<128x128xf32, #tpu.memory_space<vmem>>, vector<128x128xf32>
    tpu.vector_store %arg8[%c0_17, %c0_18], %23 {strides = array<i32>} : memref<128x128xf32, #tpu.memory_space<vmem>>, vector<128x128xf32>,
    return
  }
  func.func @transform_0(%arg0: i32) -> (i32, i32) {
    %c0_i32 = arith.constant 0 : i32
    %c0_i32_0 = arith.constant 0 : i32
    return %arg0, %c0_i32 : i32, i32
  }
  func.func @transform_1(%arg0: i32) -> (i32, i32) {
    %c0_i32 = arith.constant 0 : i32
    %c0_i32_0 = arith.constant 0 : i32
    %c0_i32_1 = arith.constant 0 : i32
    return %c0_i32, %c0_i32_0 : i32, i32
  }
  func.func @transform_2(%arg0: i32) -> (i32, i32) {
    %c0_i32 = arith.constant 0 : i32
    %c0_i32_0 = arith.constant 0 : i32
    %c0_i32_1 = arith.constant 0 : i32
    return %c0_i32, %c0_i32_0 : i32, i32
  }
  func.func @transform_3(%arg0: i32) -> (i32, i32) {
    %c0_i32 = arith.constant 0 : i32
    %c0_i32_0 = arith.constant 0 : i32
    %c0_i32_1 = arith.constant 0 : i32
    return %c0_i32, %c0_i32_0 : i32, i32
  }
  func.func @transform_4(%arg0: i32) -> (i32, i32) {
    %c0_i32 = arith.constant 0 : i32
    %c0_i32_0 = arith.constant 0 : i32
    %c0_i32_1 = arith.constant 0 : i32
    return %c0_i32, %c0_i32_0 : i32, i32
  }
  func.func @transform_5(%arg0: i32) -> (i32, i32) {
    %c0_i32 = arith.constant 0 : i32
    %c0_i32_0 = arith.constant 0 : i32
    %c0_i32_1 = arith.constant 0 : i32
    return %c0_i32, %c0_i32_0 : i32, i32
  }
  func.func @transform_6(%arg0: i32) -> (i32, i32) {
    %c0_i32 = arith.constant 0 : i32
    %c0_i32_0 = arith.constant 0 : i32
    %c0_i32_1 = arith.constant 0 : i32
    return %c0_i32, %c0_i32_0 : i32, i32
  }
  func.func @transform_7(%arg0: i32) -> (i32, i32) {
    %c0_i32 = arith.constant 0 : i32
    %c0_i32_0 = arith.constant 0 : i32
    return %arg0, %c0_i32 : i32, i32
  }
}

</mosaic_0001>

<bundles_post_ra>
// kernel: deterministic_policy_forward.1
= control target key start
LH: loop header
LB: loop body
LE: loop exit
PB: predicated region body
PF: predicated region fallthrough
CT: control target
= control target key end

     0   :  { %12 = vsyncpa [#allocation3], 0  ;;  %s1585_s24 = smov 0   ;;  %s1901_s0 = inlined_call_operand.vmem [shape: f32[256,32], index: 0, kind: input, shape index: {}]   ;;  %s1902_s1 = inlined_call_operand.vmem [shape: bf16[32,256], index: 1, kind: input, shape index: {}]   ;;  %s1903_s2 = inlined_call_operand.vmem [shape: f32[1,256], index: 2, kind: input, shape index: {}]   ;;  %s1904_s3 = inlined_call_operand.vmem [shape: bf16[256,256], index: 3, kind: input, shape index: {}]   ;;  %s1905_s4 = inlined_call_operand.vmem [shape: f32[1,256], index: 4, kind: input, shape index: {}]   ;;  %s1906_s5 = inlined_call_operand.hbm [shape: bf16[256,128], index: 5, kind: input, shape index: {}]   ;;  %s1907_s6 = inlined_call_operand.vmem [shape: f32[1,128], index: 6, kind: input, shape index: {}]   ;;  %s1908_s7 = inlined_call_operand.vmem [shape: f32[256,128], index: 7, kind: output, shape index: {}]  }
   0x1 LB: > { %s1241_s25 = sadd.s32 4294967295, %s1539_s24   ;;  %p1243_p0 = scmp.ge.s32.totalorder %s1539_s24, 1  ;;  %s1539_s24 = sphi %s1585_s24, %s18_s24  }
   0x2   : > { %p201_p1 = scmp.lt.s32.totalorder %s1539_s24, 3  ;;  %s1541_s26 = smov [#allocation2]  }
   0x3   : > { %s225_s27 = sshll.u32 %s1541_s26, 4  ;;  %p1597_p3 = scmp.eq.s32.totalorder %s1241_s25, 0  ;;  %s226_s27 = int_to_ptr.vmem [resolvable:$true] %s225_s27 }
   0x4   : > { %p1593_p2 = pnand %p1243_p0, %p201_p1  ;;  %s1514_s30 = scalar_lea.vmem %s226_s27, 2048 }
   0x5   : > { %p1515_p7 = scmp.ne.s32.totalorder %s226_s27, %s1514_s30  ;;  %p1522_p10 = scmp.lt.s32.totalorder %s226_s27, %s226_s27 }
   0x6   : > { %p1383_p4 = pneg %p1593_p2  ;;  %p1523_p11 = scmp.lt.s32.totalorder %s1514_s30, %s1514_s30 }
   0x8   : > { %p1384_p5 = pnand %p1597_p3, %p1383_p4  ;;  %p1524_p12 = por %p1523_p11, %p1522_p10 }
   0xa   : > { %p1505_p6 = pneg %p1384_p5 }
   0xc   : > { %p1517_p8 = pnand %p1515_p7, %p1505_p6 }
   0xe   : > { %p1518_p9 = pneg %p1517_p8 }
  0x10   : > { %p1525_p13 = pnand %p1524_p12, %p1518_p9 }
  0x12   : > { %1528 = shalt.err (!%p1525_p13)
}
  0x13   : > { %s1542_s8 = smov 64   ;;  %s1543_s9 = smov 4  }
  0x14   : > { %1386 = dma.hbm_to_vmem [thread:$0]  (!%p1384_p5), %s1906_s5, 2048, %s226_s27, [#allocation3], %s1542_s8, %s1542_s8, %s1543_s9  }
  0x15   : > { %253 = sbr.rel (%p1593_p2) target bundleno = 722 (0x2d2), region = 48 }
  0x1a   : > { %1534 = dma.done.wait (%p1597_p3), [#allocation3], 2048  }
  0x1b   : > { %1536 = vsyncadd (%p1597_p3), [#allocation3], 4294965248  ;;  %s1248_s12 = sshll.u32 %s1241_s25, 4  ;;  %v1544_v0 = vmov 0   ;;  %v1401_v1 = vld [vmem:[%s1902_s1 + $0x14] ss:$8 sps:$4 sm:$0xff]  }
  0x1c   : > { %415 = vmatprep.mubr.bf16.mxu0 %v1544_v0  ;;  %p286_p0 = scmp.lt.s32.totalorder %s1248_s12, 31  ;;  %v1403_v2 = vld [vmem:[%s1902_s1 + $0x10] ss:$8 sps:$4 sm:$0xff]   ;;  %395 = vmatprep.subr.bf16.mxu0 %v1401_v1  ;;  %v1404_v3 = vld [vmem:[%s1902_s1 + $0x4] ss:$8 sps:$4 sm:$0xff]   ;;  %vm358_vm0 = vcmask 261120  }
  0x1d   : > { %396 = vmatpush1.bf16.msra.mxu0 %v1403_v2  ;;  %v1406_v4 = vld [vmem:[%s1902_s1] ss:$8 sps:$4 sm:$0xff]   ;;  %v1407_v8 = vld [vmem:[%s1904_s3 + $0x74] ss:$8 sps:$4 sm:$0xff]   ;;  %v1409_v9 = vld [vmem:[%s1904_s3 + $0x70] ss:$8 sps:$4 sm:$0xff]  }
  0x1e   : > { %s1912_s12 = smov (!%p286_p0, %s1248_s12), 31  ;;  %397 = vmatprep.subr.bf16.mxu0 %v1404_v3  ;;  %748 = vmatprep.subr.bf16.mxu1 %v1407_v8  ;;  %v1410_v11 = vld [vmem:[%s1904_s3 + $0x64] ss:$8 sps:$4 sm:$0xff]   ;;  %v1412_v13 = vld [vmem:[%s1904_s3 + $0x60] ss:$8 sps:$4 sm:$0xff]   ;;  %v1455_v61 = vld [vmem:[#allocation2 + $0x78] sm:$0xff]  }
  0x1f   : > { %s1249_s13 = sshll.u32 %s1912_s12, 3  ;;  %749 = vmatpush1.bf16.msra.mxu1 %v1409_v9  ;;  %v1413_v14 = vld [vmem:[%s1904_s3 + $0x54] ss:$8 sps:$4 sm:$0xff]   ;;  %v1415_v16 = vld [vmem:[%s1904_s3 + $0x50] ss:$8 sps:$4 sm:$0xff]   ;;  %v1459_v1 = vld [vmem:[#allocation2 + $0x68] sm:$0xff]  }
  0x20   : > { %s1626_s18 = scalar_lea.vmem %s1901_s0, %s1249_s13  ;;  %750 = vmatprep.subr.bf16.mxu1 %v1410_v11  ;;  %v1416_v17 = vld [vmem:[%s1904_s3 + $0x44] ss:$8 sps:$4 sm:$0xff]   ;;  %v1418_v20 = vld [vmem:[%s1904_s3 + $0x40] ss:$8 sps:$4 sm:$0xff]   ;;  %v1419_v21 = vld [vmem:[%s1904_s3 + $0x34] ss:$8 sps:$4 sm:$0xff]   ;;  %v328_v11 = vlaneseq  ;;  %s1868_s20 = scalar_lea.vmem %s1908_s7, %s1249_s13 }
  0x21   : > { %v298_v5 = vld [vmem:[%s1626_s18] sm:$0xff]  ;;  %v299_v6 = vld [vmem:[%s1626_s18 + $0x8] sm:$0xff]  ;;  %398 = vmatpush1.bf16.msra.mxu0 %v1406_v4  ;;  %v300_v10 = vld [vmem:[%s1626_s18 + $0x10] sm:$0xff] }
  0x22   : > { %v314_v7 = vpack.c.bf16 %v299_v6, %v298_v5  ;;  %v301_v12 = vld [vmem:[%s1626_s18 + $0x18] sm:$0xff]  ;;  %v302_v18 = vld [vmem:[%s1626_s18 + $0x20] sm:$0xff]  ;;  %v303_v19 = vld [vmem:[%s1626_s18 + $0x28] sm:$0xff]  ;;  %1315 = vmatprep.subr.bf16.mxu0 %v1455_v61 }
  0x23   : > { %v315_v15 = vpack.c.bf16 %v301_v12, %v300_v10  ;;  %751 = vmatpush1.bf16.msra.mxu1 %v1412_v13  ;;  %v316_v22 = vpack.c.bf16 %v303_v19, %v302_v18  ;;  %v1421_v23 = vld [vmem:[%s1904_s3 + $0x30] ss:$8 sps:$4 sm:$0xff]   ;;  %v1422_v24 = vld [vmem:[%s1904_s3 + $0x24] ss:$8 sps:$4 sm:$0xff]   ;;  %v1424_v27 = vld [vmem:[%s1904_s3 + $0x20] ss:$8 sps:$4 sm:$0xff]  }
  0x24   : > { %1256 = vmatmul.mubr.msk.bf16.vlgmr.msra.gmra.mxu0 %vm358_vm0, %v314_v7  ;;  %752 = vmatprep.subr.bf16.mxu1 %v1413_v14  ;;  %v304_v25 = vld [vmem:[%s1626_s18 + $0x30] sm:$0xff]  ;;  %v305_v26 = vld [vmem:[%s1626_s18 + $0x38] sm:$0xff]  ;;  %v1428_v31 = vld [vmem:[%s1904_s3 + $0x4] ss:$8 sps:$4 sm:$0xff]   ;;  %v1764_v12 = vshrl.u32 %v328_v11, 7 }
  0x25   : > { %425 = vmatprep.mubr.bf16.mxu0 %v1544_v0  ;;  %v1425_v28 = vld [vmem:[%s1904_s3 + $0x14] ss:$8 sps:$4 sm:$0xff]   ;;  %v1427_v29 = vld [vmem:[%s1904_s3 + $0x10] ss:$8 sps:$4 sm:$0xff]   ;;  %v317_v30 = vpack.c.bf16 %v305_v26, %v304_v25  ;;  %v306_v32 = vld [vmem:[%s1626_s18 + $0x40] sm:$0xff] }
  0x26   : > { %v307_v33 = vld [vmem:[%s1626_s18 + $0x48] sm:$0xff]  ;;  %v1431_v35 = vld [vmem:[%s1904_s3 + $0xf4] ss:$8 sps:$4 sm:$0xff]   ;;  %v1433_v37 = vld [vmem:[%s1904_s3 + $0xf0] ss:$8 sps:$4 sm:$0xff]   ;;  %v334_v13 = vsub.s32 1, %v1764_v12 }
  0x27   : > { %753 = vmatpush1.bf16.msra.mxu1 %v1415_v16  ;;  %v1430_v34 = vld [vmem:[%s1904_s3] ss:$8 sps:$4 sm:$0xff]   ;;  %v318_v36 = vpack.c.bf16 %v307_v33, %v306_v32  ;;  %v1434_v38 = vld [vmem:[%s1904_s3 + $0xe4] ss:$8 sps:$4 sm:$0xff]   ;;  %v308_v39 = vld [vmem:[%s1626_s18 + $0x50] sm:$0xff]  ;;  %v330_v14 = vsub.s32 0, %v1764_v12 }
  0x28   : > { %754 = vmatprep.subr.bf16.mxu1 %v1416_v17  ;;  %v309_v40 = vld [vmem:[%s1626_s18 + $0x58] sm:$0xff]  ;;  %v1436_v41 = vld [vmem:[%s1904_s3 + $0xe0] ss:$8 sps:$4 sm:$0xff]   ;;  %v1440_v45 = vld [vmem:[%s1904_s3 + $0xc4] ss:$8 sps:$4 sm:$0xff]  }
  0x29   : > { %v1437_v42 = vld [vmem:[%s1904_s3 + $0xd4] ss:$8 sps:$4 sm:$0xff]   ;;  %v319_v43 = vpack.c.bf16 %v309_v40, %v308_v39  ;;  %v1439_v44 = vld [vmem:[%s1904_s3 + $0xd0] ss:$8 sps:$4 sm:$0xff]   ;;  %v310_v46 = vld [vmem:[%s1626_s18 + $0x60] sm:$0xff] }
  0x2a   : > { %v311_v47 = vld [vmem:[%s1626_s18 + $0x68] sm:$0xff]  ;;  %v1443_v49 = vld [vmem:[%s1904_s3 + $0xb4] ss:$8 sps:$4 sm:$0xff]   ;;  %v1445_v51 = vld [vmem:[%s1904_s3 + $0xb0] ss:$8 sps:$4 sm:$0xff]  }
  0x2b   : > { %755 = vmatpush1.bf16.msra.mxu1 %v1418_v20  ;;  %v1442_v48 = vld [vmem:[%s1904_s3 + $0xc0] ss:$8 sps:$4 sm:$0xff]   ;;  %v320_v50 = vpack.c.bf16 %v311_v47, %v310_v46  ;;  %v312_v52 = vld [vmem:[%s1626_s18 + $0x70] sm:$0xff]  ;;  %v313_v53 = vld [vmem:[%s1626_s18 + $0x78] sm:$0xff] }
  0x2c   : > { %1257 = vmatmul.mubr.msk.bf16.gmra.mxu0 %vm358_vm0, %v315_v15  ;;  %756 = vmatprep.subr.bf16.mxu1 %v1419_v21  ;;  %v321_v54 = vpack.c.bf16 %v313_v53, %v312_v52  ;;  %v1446_v55 = vld [vmem:[%s1904_s3 + $0xa4] ss:$8 sps:$4 sm:$0xff]   ;;  %v1448_v56 = vld [vmem:[%s1904_s3 + $0xa0] ss:$8 sps:$4 sm:$0xff]   ;;  %v1449_v57 = vld [vmem:[%s1904_s3 + $0x94] ss:$8 sps:$4 sm:$0xff]  }
  0x2d   : > { %435 = vmatprep.mubr.bf16.mxu0 %v1544_v0  ;;  %v1451_v58 = vld [vmem:[%s1904_s3 + $0x90] ss:$8 sps:$4 sm:$0xff]   ;;  %v1452_v59 = vld [vmem:[%s1904_s3 + $0x84] ss:$8 sps:$4 sm:$0xff]   ;;  %v1454_v60 = vld [vmem:[%s1904_s3 + $0x80] ss:$8 sps:$4 sm:$0xff]  }
  0x2e   : > { %v1456_v62 = vld [vmem:[#allocation2 + $0x38] sm:$0xff]   ;;  %v1457_v63 = vld [vmem:[#allocation2 + $0x70] sm:$0xff]   ;;  %v1460_v2 = vld [vmem:[#allocation2 + $0x28] sm:$0xff]  }
  0x2f   : > { %757 = vmatpush1.bf16.msra.mxu1 %v1421_v23  ;;  %1316 = vmatpush3.bf16.msra.mxu0 %v1456_v62  ;;  %v1461_v3 = vld [vmem:[#allocation2 + $0x60] sm:$0xff]   ;;  %v1463_v5 = vld [vmem:[#allocation2 + $0x58] sm:$0xff]   ;;  %v1465_v7 = vld [vmem:[#allocation2 + $0x50] sm:$0xff]  }
  0x30   : > { %758 = vmatprep.subr.bf16.mxu1 %v1422_v24  ;;  %1317 = vmatprep.subr.bf16.mxu0 %v1457_v63  ;;  %v1462_v4 = vld [vmem:[#allocation2 + $0x20] sm:$0xff]   ;;  %v1464_v6 = vld [vmem:[#allocation2 + $0x18] sm:$0xff]   ;;  %v1466_v8 = vld [vmem:[#allocation2 + $0x10] sm:$0xff]  }
  0x31   : > { %v1467_v9 = vld [vmem:[#allocation2 + $0x48] sm:$0xff]   ;;  %v326_v15 = vld [vmem:[%s1903_s2] sm:$0x3] }
  0x32   : > { %v1468_v10 = vld [vmem:[#allocation2 + $0x8] sm:$0xff]   ;;  %v1773_v17 = vrot.slane %v326_v15, %v334_v13  ;;  %v1777_v18 = vrot.slane %v326_v15, %v330_v14 }
  0x33   : > { %759 = vmatpush1.bf16.msra.mxu1 %v1424_v27 }
  0x34   : > { %1258 = vmatmul.mubr.msk.bf16.gmra.mxu0 %vm358_vm0, %v316_v22  ;;  %760 = vmatprep.subr.bf16.mxu1 %v1425_v28 }
  0x35   : > { %445 = vmatprep.mubr.bf16.mxu0 %v1544_v0 }
  0x37   : > { %761 = vmatpush1.bf16.msra.mxu1 %v1427_v29 }
  0x38   : > { %762 = vmatprep.subr.bf16.mxu1 %v1428_v31 }
  0x3b   : > { %763 = vmatpush1.bf16.msra.mxu1 %v1430_v34 }
  0x3c   : > { %1259 = vmatmul.mubr.msk.bf16.gmra.mxu0 %vm358_vm0, %v317_v30  ;;  %764 = vmatprep.subr.bf16.mxu1 %v1431_v35 }
  0x3d   : > { %455 = vmatprep.mubr.bf16.mxu0 %v1544_v0 }
  0x3f   : > { %765 = vmatpush2.bf16.msra.mxu1 %v1433_v37 }
  0x40   : > { %766 = vmatprep.subr.bf16.mxu1 %v1434_v38 }
  0x43   : > { %767 = vmatpush2.bf16.msra.mxu1 %v1436_v41 }
  0x44   : > { %1260 = vmatmul.mubr.msk.bf16.gmra.mxu0 %vm358_vm0, %v318_v36  ;;  %768 = vmatprep.subr.bf16.mxu1 %v1437_v42 }
  0x45   : > { %465 = vmatprep.mubr.bf16.mxu0 %v1544_v0 }
  0x47   : > { %769 = vmatpush2.bf16.msra.mxu1 %v1439_v44 }
  0x48   : > { %770 = vmatprep.subr.bf16.mxu1 %v1440_v45 }
  0x4b   : > { %771 = vmatpush2.bf16.msra.mxu1 %v1442_v48 }
  0x4c   : > { %1261 = vmatmul.mubr.msk.bf16.gmra.mxu0 %vm358_vm0, %v319_v43  ;;  %772 = vmatprep.subr.bf16.mxu1 %v1443_v49 }
  0x4d   : > { %475 = vmatprep.mubr.bf16.mxu0 %v1544_v0 }
  0x4f   : > { %773 = vmatpush2.bf16.msra.mxu1 %v1445_v51 }
  0x50   : > { %774 = vmatprep.subr.bf16.mxu1 %v1446_v55 }
  0x53   : > { %775 = vmatpush2.bf16.msra.mxu1 %v1448_v56 }
  0x54   : > { %1262 = vmatmul.mubr.msk.bf16.gmra.mxu0 %vm358_vm0, %v320_v50  ;;  %776 = vmatprep.subr.bf16.mxu1 %v1449_v57 }
  0x55   : > { %485 = vmatprep.mubr.bf16.mxu0 %v1544_v0  ;;  %v1458_v0 = vld [vmem:[#allocation2 + $0x30] sm:$0xff]  }
  0x56   : > { %1318 = vmatpush3.bf16.msra.mxu0 %v1458_v0 }
  0x57   : > { %777 = vmatpush2.bf16.msra.mxu1 %v1451_v58  ;;  %1319 = vmatprep.subr.bf16.mxu0 %v1459_v1 }
  0x58   : > { %778 = vmatprep.subr.bf16.mxu1 %v1452_v59 }
  0x5a   : > { %1320 = vmatpush3.bf16.msra.mxu0 %v1460_v2 }
  0x5b   : > { %779 = vmatpush2.bf16.msra.mxu1 %v1454_v60  ;;  %1321 = vmatprep.subr.bf16.mxu0 %v1461_v3 }
  0x5c   : > { %1263 = vmatmul.mubr.msk.bf16.gmra.mxu0 %vm358_vm0, %v321_v54 }
  0x5e   : > { %1322 = vmatpush3.bf16.msra.mxu0 %v1462_v4 }
  0x5f   : > { %1323 = vmatprep.subr.bf16.mxu0 %v1463_v5 }
  0x62   : > { %1324 = vmatpush3.bf16.msra.mxu0 %v1464_v6 }
  0x63   : > { %1325 = vmatprep.subr.bf16.mxu0 %v1465_v7 }
  0x66   : > { %1326 = vmatpush3.bf16.msra.mxu0 %v1466_v8 }
  0x67   : > { %1327 = vmatprep.subr.bf16.mxu0 %v1467_v9 }
  0x6a   : > { %1328 = vmatpush3.bf16.msra.mxu0 %v1468_v10 }
  0xe4   : > { %v417_v16 = vpop.f32.mrf.mxu0 }
  0xe5   : > { %v418_v23 = vadd.f32 %v417_v16, %v1777_v18 }
  0xe6   : > { %v419_v19 = vpop.f32.mrf.mxu0 }
  0xe7   : > { %v420_v21 = vadd.f32 %v419_v19, %v1773_v17  ;;  %v496_v30 = vmax.f32 %v418_v23, 0.0 }
  0xe8   : > { %v421_v20 = vpop.f32.mrf.mxu0 }
  0xe9   : > { %v422_v22 = vadd.f32 %v421_v20, %v1777_v18  ;;  %v497_v28 = vmax.f32 %v420_v21, 0.0 }
  0xea   : > { %v423_v24 = vpop.f32.mrf.mxu0 }
  0xeb   : > { %v424_v25 = vadd.f32 %v423_v24, %v1773_v17  ;;  %v498_v26 = vmax.f32 %v422_v22, 0.0 }
  0xec   : > { %v427_v27 = vpop.f32.mrf.mxu0 }
  0xed   : > { %v499_v29 = vmax.f32 %v424_v25, 0.0  ;;  %v528_v33 = vpack.c.bf16 %v498_v26, %v496_v30  ;;  %v428_v37 = vadd.f32 %v427_v27, %v1777_v18 }
  0xee   : > { %v429_v31 = vpop.f32.mrf.mxu0 }
  0xef   : > { %v529_v32 = vpack.c.bf16 %v499_v29, %v497_v28  ;;  %v430_v35 = vadd.f32 %v429_v31, %v1773_v17  ;;  %v500_v44 = vmax.f32 %v428_v37, 0.0 }
  0xf0   : > { %v431_v34 = vpop.f32.mrf.mxu0 }
  0xf1   : > { %v432_v36 = vadd.f32 %v431_v34, %v1777_v18  ;;  %780 = vmatprep.mubr.bf16.mxu1 %v529_v32  ;;  %v501_v42 = vmax.f32 %v430_v35, 0.0 }
  0xf2   : > { %v433_v38 = vpop.f32.mrf.mxu0  ;;  %781 = vmatmul.mubr.bf16.vlgmr.msra.gmra.mxu1 %v528_v33 }
  0xf3   : > { %v434_v39 = vadd.f32 %v433_v38, %v1773_v17  ;;  %v502_v40 = vmax.f32 %v432_v36, 0.0 }
  0xf4   : > { %v437_v41 = vpop.f32.mrf.mxu0 }
  0xf5   : > { %v503_v43 = vmax.f32 %v434_v39, 0.0  ;;  %v530_v47 = vpack.c.bf16 %v502_v40, %v500_v44  ;;  %v438_v51 = vadd.f32 %v437_v41, %v1777_v18 }
  0xf6   : > { %v439_v45 = vpop.f32.mrf.mxu0 }
  0xf7   : > { %v531_v46 = vpack.c.bf16 %v503_v43, %v501_v42  ;;  %v440_v49 = vadd.f32 %v439_v45, %v1773_v17  ;;  %v504_v58 = vmax.f32 %v438_v51, 0.0 }
  0xf8   : > { %v441_v48 = vpop.f32.mrf.mxu0 }
  0xf9   : > { %v442_v50 = vadd.f32 %v441_v48, %v1777_v18  ;;  %790 = vmatprep.mubr.bf16.mxu1 %v531_v46  ;;  %v505_v56 = vmax.f32 %v440_v49, 0.0 }
  0xfa   : > { %v443_v52 = vpop.f32.mrf.mxu0  ;;  %791 = vmatmul.mubr.bf16.gmra.mxu1 %v530_v47 }
  0xfb   : > { %v444_v53 = vadd.f32 %v443_v52, %v1773_v17  ;;  %v506_v54 = vmax.f32 %v442_v50, 0.0 }
  0xfc   : > { %v447_v55 = vpop.f32.mrf.mxu0 }
  0xfd   : > { %v507_v57 = vmax.f32 %v444_v53, 0.0  ;;  %v532_v61 = vpack.c.bf16 %v506_v54, %v504_v58  ;;  %v448_v1 = vadd.f32 %v447_v55, %v1777_v18 }
  0xfe   : > { %v449_v59 = vpop.f32.mrf.mxu0 }
  0xff   : > { %v533_v60 = vpack.c.bf16 %v507_v57, %v505_v56  ;;  %v450_v63 = vadd.f32 %v449_v59, %v1773_v17  ;;  %v508_v8 = vmax.f32 %v448_v1, 0.0 }
 0x100   : > { %v451_v62 = vpop.f32.mrf.mxu0 }
 0x101   : > { %v452_v0 = vadd.f32 %v451_v62, %v1777_v18  ;;  %800 = vmatprep.mubr.bf16.mxu1 %v533_v60  ;;  %v509_v6 = vmax.f32 %v450_v63, 0.0 }
 0x102   : > { %v453_v2 = vpop.f32.mrf.mxu0  ;;  %801 = vmatmul.mubr.bf16.gmra.mxu1 %v532_v61 }
 0x103   : > { %v454_v3 = vadd.f32 %v453_v2, %v1773_v17  ;;  %v510_v4 = vmax.f32 %v452_v0, 0.0 }
 0x104   : > { %v457_v5 = vpop.f32.mrf.mxu0 }
 0x105   : > { %v511_v7 = vmax.f32 %v454_v3, 0.0  ;;  %v534_v11 = vpack.c.bf16 %v510_v4, %v508_v8  ;;  %v458_v20 = vadd.f32 %v457_v5, %v1777_v18  ;;  %v1470_v8 = vld [vmem:[#allocation2] sm:$0xff]  }
 0x106   : > { %v459_v9 = vpop.f32.mrf.mxu0 }
 0x107   : > { %v535_v10 = vpack.c.bf16 %v511_v7, %v509_v6  ;;  %v460_v16 = vadd.f32 %v459_v9, %v1773_v17  ;;  %v512_v27 = vmax.f32 %v458_v20, 0.0  ;;  %v1469_v7 = vld [vmem:[#allocation2 + $0x40] sm:$0xff]  }
 0x108   : > { %v461_v15 = vpop.f32.mrf.mxu0  ;;  %1329 = vmatprep.subr.bf16.mxu0 %v1469_v7 }
 0x109   : > { %v462_v19 = vadd.f32 %v461_v15, %v1777_v18  ;;  %810 = vmatprep.mubr.bf16.mxu1 %v535_v10  ;;  %v513_v25 = vmax.f32 %v460_v16, 0.0  ;;  %1330 = vmatpush3.bf16.msra.mxu0 %v1470_v8 }
 0x10a   : > { %v463_v21 = vpop.f32.mrf.mxu0  ;;  %811 = vmatmul.mubr.bf16.gmra.mxu1 %v534_v11 }
 0x10b   : > { %v464_v22 = vadd.f32 %v463_v21, %v1773_v17  ;;  %v514_v23 = vmax.f32 %v462_v19, 0.0 }
 0x10c   : > { %v467_v24 = vpop.f32.mrf.mxu0 }
 0x10d   : > { %v515_v26 = vmax.f32 %v464_v22, 0.0  ;;  %v536_v30 = vpack.c.bf16 %v514_v23, %v512_v27  ;;  %v468_v34 = vadd.f32 %v467_v24, %v1777_v18 }
 0x10e   : > { %v469_v28 = vpop.f32.mrf.mxu0 }
 0x10f   : > { %v537_v29 = vpack.c.bf16 %v515_v26, %v513_v25  ;;  %v470_v32 = vadd.f32 %v469_v28, %v1773_v17  ;;  %v516_v41 = vmax.f32 %v468_v34, 0.0 }
 0x110   : > { %v471_v31 = vpop.f32.mrf.mxu0 }
 0x111   : > { %v472_v33 = vadd.f32 %v471_v31, %v1777_v18  ;;  %820 = vmatprep.mubr.bf16.mxu1 %v537_v29  ;;  %v517_v39 = vmax.f32 %v470_v32, 0.0 }
 0x112   : > { %v473_v35 = vpop.f32.mrf.mxu0  ;;  %821 = vmatmul.mubr.bf16.gmra.mxu1 %v536_v30 }
 0x113   : > { %v474_v36 = vadd.f32 %v473_v35, %v1773_v17  ;;  %v518_v37 = vmax.f32 %v472_v33, 0.0 }
 0x114   : > { %v477_v38 = vpop.f32.mrf.mxu0 }
 0x115   : > { %v519_v40 = vmax.f32 %v474_v36, 0.0  ;;  %v538_v44 = vpack.c.bf16 %v518_v37, %v516_v41  ;;  %v478_v48 = vadd.f32 %v477_v38, %v1777_v18 }
 0x116   : > { %v479_v42 = vpop.f32.mrf.mxu0 }
 0x117   : > { %v539_v43 = vpack.c.bf16 %v519_v40, %v517_v39  ;;  %v480_v46 = vadd.f32 %v479_v42, %v1773_v17  ;;  %v520_v55 = vmax.f32 %v478_v48, 0.0 }
 0x118   : > { %v481_v45 = vpop.f32.mrf.mxu0 }
 0x119   : > { %v482_v47 = vadd.f32 %v481_v45, %v1777_v18  ;;  %830 = vmatprep.mubr.bf16.mxu1 %v539_v43  ;;  %v521_v53 = vmax.f32 %v480_v46, 0.0 }
 0x11a   : > { %v483_v49 = vpop.f32.mrf.mxu0  ;;  %831 = vmatmul.mubr.bf16.gmra.mxu1 %v538_v44 }
 0x11b   : > { %v484_v50 = vadd.f32 %v483_v49, %v1773_v17  ;;  %v522_v51 = vmax.f32 %v482_v47, 0.0 }
 0x11c   : > { %v487_v52 = vpop.f32.mrf.mxu0 }
 0x11d   : > { %v523_v54 = vmax.f32 %v484_v50, 0.0  ;;  %v540_v58 = vpack.c.bf16 %v522_v51, %v520_v55  ;;  %v488_v62 = vadd.f32 %v487_v52, %v1777_v18 }
 0x11e   : > { %v489_v56 = vpop.f32.mrf.mxu0 }
 0x11f   : > { %v541_v57 = vpack.c.bf16 %v523_v54, %v521_v53  ;;  %v490_v60 = vadd.f32 %v489_v56, %v1773_v17  ;;  %v524_v4 = vmax.f32 %v488_v62, 0.0 }
 0x120   : > { %v491_v59 = vpop.f32.mrf.mxu0 }
 0x121   : > { %v492_v61 = vadd.f32 %v491_v59, %v1777_v18  ;;  %840 = vmatprep.mubr.bf16.mxu1 %v541_v57  ;;  %v525_v2 = vmax.f32 %v490_v60, 0.0  ;;  %v576_v18 = vld [vmem:[%s1905_s4] sm:$0x3] }
 0x122   : > { %v493_v63 = vpop.f32.mrf.mxu0  ;;  %841 = vmatmul.mubr.bf16.gmra.mxu1 %v540_v58  ;;  %v1820_v10 = vrot.slane %v576_v18, %v330_v14 }
 0x123   : > { %v494_v0 = vadd.f32 %v493_v63, %v1773_v17  ;;  %v526_v1 = vmax.f32 %v492_v61, 0.0  ;;  %v1816_v17 = vrot.slane %v576_v18, %v334_v13 }
 0x125   : > { %v527_v3 = vmax.f32 %v494_v0, 0.0  ;;  %v542_v6 = vpack.c.bf16 %v526_v1, %v524_v4 }
 0x127   : > { %v543_v5 = vpack.c.bf16 %v527_v3, %v525_v2 }
 0x129   : > { %850 = vmatprep.mubr.bf16.mxu1 %v543_v5 }
 0x12a   : > { %851 = vmatmul.mubr.bf16.gmra.mxu1 %v542_v6 }
 0x1b2   : > { %v782_v9 = vpop.f32.mrf.mxu1 }
 0x1b3   : > { %v783_v20 = vadd.f32 %v782_v9, %v1820_v10 }
 0x1b4   : > { %v784_v11 = vpop.f32.mrf.mxu1 }
 0x1b5   : > { %v785_v16 = vadd.f32 %v784_v11, %v1816_v17  ;;  %v861_v26 = vmax.f32 %v783_v20, 0.0 }
 0x1b6   : > { %v786_v15 = vpop.f32.mrf.mxu1 }
 0x1b7   : > { %v787_v19 = vadd.f32 %v786_v15, %v1820_v10  ;;  %v862_v25 = vmax.f32 %v785_v16, 0.0 }
 0x1b8   : > { %v788_v21 = vpop.f32.mrf.mxu1 }
 0x1b9   : > { %v789_v22 = vadd.f32 %v788_v21, %v1816_v17  ;;  %v863_v23 = vmax.f32 %v787_v19, 0.0 }
 0x1ba   : > { %v792_v24 = vpop.f32.mrf.mxu1 }
 0x1bb   : > { %v864_v13 = vmax.f32 %v789_v22, 0.0  ;;  %v893_v14 = vpack.c.bf16 %v863_v23, %v861_v26  ;;  %v793_v31 = vadd.f32 %v792_v24, %v1820_v10 }
 0x1bc   : > { %v794_v27 = vpop.f32.mrf.mxu1 }
 0x1bd   : > { %v894_v12 = vpack.c.bf16 %v864_v13, %v862_v25  ;;  %v795_v29 = vadd.f32 %v794_v27, %v1816_v17  ;;  %v865_v38 = vmax.f32 %v793_v31, 0.0 }
 0x1be   : > { %v796_v28 = vpop.f32.mrf.mxu1 }
 0x1bf   : > { %v797_v30 = vadd.f32 %v796_v28, %v1820_v10  ;;  %1076 = vmatprep.mubr.bf16.mxu0 %v894_v12  ;;  %v866_v36 = vmax.f32 %v795_v29, 0.0 }
 0x1c0   : > { %v798_v32 = vpop.f32.mrf.mxu1  ;;  %1077 = vmatmul.mubr.bf16.vlgmr.msra.gmra.mxu0 %v893_v14 }
 0x1c1   : > { %v799_v33 = vadd.f32 %v798_v32, %v1816_v17  ;;  %v867_v34 = vmax.f32 %v797_v30, 0.0 }
 0x1c2   : > { %v802_v35 = vpop.f32.mrf.mxu1 }
 0x1c3   : > { %v868_v37 = vmax.f32 %v799_v33, 0.0  ;;  %v895_v41 = vpack.c.bf16 %v867_v34, %v865_v38  ;;  %v803_v45 = vadd.f32 %v802_v35, %v1820_v10 }
 0x1c4   : > { %v804_v39 = vpop.f32.mrf.mxu1 }
 0x1c5   : > { %v896_v40 = vpack.c.bf16 %v868_v37, %v866_v36  ;;  %v805_v43 = vadd.f32 %v804_v39, %v1816_v17  ;;  %v869_v52 = vmax.f32 %v803_v45, 0.0 }
 0x1c6   : > { %v806_v42 = vpop.f32.mrf.mxu1 }
 0x1c7   : > { %v807_v44 = vadd.f32 %v806_v42, %v1820_v10  ;;  %1084 = vmatprep.mubr.bf16.mxu0 %v896_v40  ;;  %v870_v50 = vmax.f32 %v805_v43, 0.0 }
 0x1c8   : > { %v808_v46 = vpop.f32.mrf.mxu1  ;;  %1085 = vmatmul.mubr.bf16.gmra.mxu0 %v895_v41 }
 0x1c9   : > { %v809_v47 = vadd.f32 %v808_v46, %v1816_v17  ;;  %v871_v48 = vmax.f32 %v807_v44, 0.0 }
 0x1ca   : > { %v812_v49 = vpop.f32.mrf.mxu1 }
 0x1cb   : > { %v872_v51 = vmax.f32 %v809_v47, 0.0  ;;  %v897_v55 = vpack.c.bf16 %v871_v48, %v869_v52  ;;  %v813_v59 = vadd.f32 %v812_v49, %v1820_v10 }
 0x1cc   : > { %v814_v53 = vpop.f32.mrf.mxu1 }
 0x1cd   : > { %v898_v54 = vpack.c.bf16 %v872_v51, %v870_v50  ;;  %v815_v57 = vadd.f32 %v814_v53, %v1816_v17  ;;  %v873_v2 = vmax.f32 %v813_v59, 0.0 }
 0x1ce   : > { %v816_v56 = vpop.f32.mrf.mxu1 }
 0x1cf   : > { %v817_v58 = vadd.f32 %v816_v56, %v1820_v10  ;;  %1092 = vmatprep.mubr.bf16.mxu0 %v898_v54  ;;  %v874_v0 = vmax.f32 %v815_v57, 0.0 }
 0x1d0   : > { %v818_v60 = vpop.f32.mrf.mxu1  ;;  %1093 = vmatmul.mubr.bf16.gmra.mxu0 %v897_v55 }
 0x1d1   : > { %v819_v61 = vadd.f32 %v818_v60, %v1816_v17  ;;  %v875_v62 = vmax.f32 %v817_v58, 0.0 }
 0x1d2   : > { %v822_v63 = vpop.f32.mrf.mxu1 }
 0x1d3   : > { %v876_v1 = vmax.f32 %v819_v61, 0.0  ;;  %v899_v5 = vpack.c.bf16 %v875_v62, %v873_v2  ;;  %v823_v18 = vadd.f32 %v822_v63, %v1820_v10  ;;  %v1857_v63 = vld [vmem:[%s1907_s6] ss:$0 sm:$0xff] }
 0x1d4   : > { %v824_v3 = vpop.f32.mrf.mxu1 }
 0x1d5   : > { %v900_v4 = vpack.c.bf16 %v876_v1, %v874_v0  ;;  %v825_v7 = vadd.f32 %v824_v3, %v1816_v17  ;;  %v877_v21 = vmax.f32 %v823_v18, 0.0 }
 0x1d6   : > { %v826_v6 = vpop.f32.mrf.mxu1 }
 0x1d7   : > { %v827_v8 = vadd.f32 %v826_v6, %v1820_v10  ;;  %1100 = vmatprep.mubr.bf16.mxu0 %v900_v4  ;;  %v878_v19 = vmax.f32 %v825_v7, 0.0 }
 0x1d8   : > { %v828_v9 = vpop.f32.mrf.mxu1  ;;  %1101 = vmatmul.mubr.bf16.gmra.mxu0 %v899_v5 }
 0x1d9   : > { %v829_v11 = vadd.f32 %v828_v9, %v1816_v17  ;;  %v879_v15 = vmax.f32 %v827_v8, 0.0 }
 0x1da   : > { %v832_v16 = vpop.f32.mrf.mxu1 }
 0x1db   : > { %v880_v20 = vmax.f32 %v829_v11, 0.0  ;;  %v901_v24 = vpack.c.bf16 %v879_v15, %v877_v21  ;;  %v833_v27 = vadd.f32 %v832_v16, %v1820_v10 }
 0x1dc   : > { %v834_v22 = vpop.f32.mrf.mxu1 }
 0x1dd   : > { %v902_v23 = vpack.c.bf16 %v880_v20, %v878_v19  ;;  %v835_v13 = vadd.f32 %v834_v22, %v1816_v17  ;;  %v881_v32 = vmax.f32 %v833_v27, 0.0 }
 0x1de   : > { %v836_v25 = vpop.f32.mrf.mxu1 }
 0x1df   : > { %v837_v26 = vadd.f32 %v836_v25, %v1820_v10  ;;  %1108 = vmatprep.mubr.bf16.mxu0 %v902_v23  ;;  %v882_v30 = vmax.f32 %v835_v13, 0.0 }
 0x1e0   : > { %v838_v12 = vpop.f32.mrf.mxu1  ;;  %1109 = vmatmul.mubr.bf16.gmra.mxu0 %v901_v24 }
 0x1e1   : > { %v839_v14 = vadd.f32 %v838_v12, %v1816_v17  ;;  %v883_v28 = vmax.f32 %v837_v26, 0.0 }
 0x1e2   : > { %v842_v29 = vpop.f32.mrf.mxu1 }
 0x1e3   : > { %v884_v31 = vmax.f32 %v839_v14, 0.0  ;;  %v903_v35 = vpack.c.bf16 %v883_v28, %v881_v32  ;;  %v843_v39 = vadd.f32 %v842_v29, %v1820_v10 }
 0x1e4   : > { %v844_v33 = vpop.f32.mrf.mxu1 }
 0x1e5   : > { %v904_v34 = vpack.c.bf16 %v884_v31, %v882_v30  ;;  %v845_v37 = vadd.f32 %v844_v33, %v1816_v17  ;;  %v885_v46 = vmax.f32 %v843_v39, 0.0 }
 0x1e6   : > { %v846_v36 = vpop.f32.mrf.mxu1 }
 0x1e7   : > { %v847_v38 = vadd.f32 %v846_v36, %v1820_v10  ;;  %1116 = vmatprep.mubr.bf16.mxu0 %v904_v34  ;;  %v886_v44 = vmax.f32 %v845_v37, 0.0 }
 0x1e8   : > { %v848_v40 = vpop.f32.mrf.mxu1  ;;  %1117 = vmatmul.mubr.bf16.gmra.mxu0 %v903_v35 }
 0x1e9   : > { %v849_v41 = vadd.f32 %v848_v40, %v1816_v17  ;;  %v887_v42 = vmax.f32 %v847_v38, 0.0 }
 0x1ea   : > { %v852_v43 = vpop.f32.mrf.mxu1 }
 0x1eb   : > { %v888_v45 = vmax.f32 %v849_v41, 0.0  ;;  %v905_v49 = vpack.c.bf16 %v887_v42, %v885_v46  ;;  %v853_v53 = vadd.f32 %v852_v43, %v1820_v10 }
 0x1ec   : > { %v854_v47 = vpop.f32.mrf.mxu1 }
 0x1ed   : > { %v906_v48 = vpack.c.bf16 %v888_v45, %v886_v44  ;;  %v855_v51 = vadd.f32 %v854_v47, %v1816_v17  ;;  %v889_v59 = vmax.f32 %v853_v53, 0.0 }
 0x1ee   : > { %v856_v50 = vpop.f32.mrf.mxu1 }
 0x1ef   : > { %v857_v52 = vadd.f32 %v856_v50, %v1820_v10  ;;  %1124 = vmatprep.mubr.bf16.mxu0 %v906_v48  ;;  %v890_v57 = vmax.f32 %v855_v51, 0.0 }
 0x1f0   : > { %v858_v54 = vpop.f32.mrf.mxu1  ;;  %1125 = vmatmul.mubr.bf16.gmra.mxu0 %v905_v49 }
 0x1f1   : > { %v859_v55 = vadd.f32 %v858_v54, %v1816_v17  ;;  %v891_v56 = vmax.f32 %v857_v52, 0.0 }
 0x1f3   : > { %v892_v58 = vmax.f32 %v859_v55, 0.0  ;;  %v907_v61 = vpack.c.bf16 %v891_v56, %v889_v59 }
 0x1f5   : > { %v908_v60 = vpack.c.bf16 %v892_v58, %v890_v57 }
 0x1f7   : > { %1132 = vmatprep.mubr.bf16.mxu0 %v908_v60 }
 0x1f8   : > { %1133 = vmatmul.mubr.bf16.gmra.mxu0 %v907_v61 }
 0x280   : > { %v1331_v62 = vpop.f32.mrf.mxu0 }
 0x282   : > { %v1332_v0 = vpop.f32.mrf.mxu0 }
 0x283   : > { %v1333_v10 = vadd.f32 %v1332_v0, %v1331_v62 }
 0x284   : > { %v1334_v1 = vpop.f32.mrf.mxu0 }
 0x285   : > { %v1079_v2 = vadd.f32 %v1333_v10, %v1857_v63 }
 0x286   : > { %v1335_v17 = vpop.f32.mrf.mxu0 }
 0x287   : > { %1471 = vtanh.f32 %v1079_v2  ;;  %v1336_v3 = vadd.f32 %v1335_v17, %v1334_v1 }
 0x288   : > { %v1337_v4 = vpop.f32.mrf.mxu0 }
 0x289   : > { %v1082_v5 = vadd.f32 %v1336_v3, %v1857_v63 }
 0x28a   : > { %v1338_v6 = vpop.f32.mrf.mxu0 }
 0x28b   : > { %1473 = vtanh.f32 %v1082_v5  ;;  %v1339_v7 = vadd.f32 %v1338_v6, %v1337_v4 }
 0x28c   : > { %v1340_v8 = vpop.f32.mrf.mxu0 }
 0x28d   : > { %v1087_v18 = vadd.f32 %v1339_v7, %v1857_v63 }
 0x28e   : > { %v1341_v9 = vpop.f32.mrf.mxu0 }
 0x28f   : > { %1475 = vtanh.f32 %v1087_v18  ;;  %v1342_v11 = vadd.f32 %v1341_v9, %v1340_v8 }
 0x290   : > { %v1343_v15 = vpop.f32.mrf.mxu0 }
 0x291   : > { %v1090_v16 = vadd.f32 %v1342_v11, %v1857_v63 }
 0x292   : > { %v1344_v19 = vpop.f32.mrf.mxu0 }
 0x293   : > { %1477 = vtanh.f32 %v1090_v16  ;;  %v1345_v20 = vadd.f32 %v1344_v19, %v1343_v15 }
 0x294   : > { %v1472_v21 = vpop.eup %1471  ;;  %v1346_v22 = vpop.f32.mrf.mxu0 }
 0x295   : > { %1157 = vst [vmem:[%s1868_s20] sm:$0xff] %v1472_v21  ;;  %v1095_v23 = vadd.f32 %v1345_v20, %v1857_v63 }
 0x296   : > { %v1347_v24 = vpop.f32.mrf.mxu0 }
 0x297   : > { %1479 = vtanh.f32 %v1095_v23  ;;  %v1348_v25 = vadd.f32 %v1347_v24, %v1346_v22 }
 0x298   : > { %v1474_v13 = vpop.eup %1473  ;;  %v1349_v26 = vpop.f32.mrf.mxu0 }
 0x299   : > { %1158 = vst [vmem:[%s1868_s20 + $0x8] sm:$0xff] %v1474_v13  ;;  %v1098_v27 = vadd.f32 %v1348_v25, %v1857_v63 }
 0x29a   : > { %v1350_v12 = vpop.f32.mrf.mxu0 }
 0x29b   : > { %1481 = vtanh.f32 %v1098_v27  ;;  %v1351_v14 = vadd.f32 %v1350_v12, %v1349_v26 }
 0x29c   : > { %v1476_v28 = vpop.eup %1475  ;;  %v1352_v29 = vpop.f32.mrf.mxu0 }
 0x29d   : > { %1159 = vst [vmem:[%s1868_s20 + $0x10] sm:$0xff] %v1476_v28  ;;  %v1103_v30 = vadd.f32 %v1351_v14, %v1857_v63 }
 0x29e   : > { %v1353_v31 = vpop.f32.mrf.mxu0 }
 0x29f   : > { %1483 = vtanh.f32 %v1103_v30  ;;  %v1354_v32 = vadd.f32 %v1353_v31, %v1352_v29 }
 0x2a0   : > { %v1478_v33 = vpop.eup %1477  ;;  %v1355_v34 = vpop.f32.mrf.mxu0 }
 0x2a1   : > { %1160 = vst [vmem:[%s1868_s20 + $0x18] sm:$0xff] %v1478_v33  ;;  %v1106_v35 = vadd.f32 %v1354_v32, %v1857_v63 }
 0x2a2   : > { %v1356_v36 = vpop.f32.mrf.mxu0 }
 0x2a3   : > { %1485 = vtanh.f32 %v1106_v35  ;;  %v1357_v37 = vadd.f32 %v1356_v36, %v1355_v34 }
 0x2a4   : > { %v1480_v38 = vpop.eup %1479  ;;  %v1358_v39 = vpop.f32.mrf.mxu0 }
 0x2a5   : > { %1161 = vst [vmem:[%s1868_s20 + $0x20] sm:$0xff] %v1480_v38  ;;  %v1111_v40 = vadd.f32 %v1357_v37, %v1857_v63 }
 0x2a6   : > { %v1359_v41 = vpop.f32.mrf.mxu0 }
 0x2a7   : > { %1487 = vtanh.f32 %v1111_v40  ;;  %v1360_v42 = vadd.f32 %v1359_v41, %v1358_v39 }
 0x2a8   : > { %v1482_v43 = vpop.eup %1481  ;;  %v1361_v44 = vpop.f32.mrf.mxu0 }
 0x2a9   : > { %1162 = vst [vmem:[%s1868_s20 + $0x28] sm:$0xff] %v1482_v43  ;;  %v1114_v45 = vadd.f32 %v1360_v42, %v1857_v63 }
 0x2aa   : > { %v1362_v46 = vpop.f32.mrf.mxu0 }
 0x2ab   : > { %1489 = vtanh.f32 %v1114_v45  ;;  %v1363_v47 = vadd.f32 %v1362_v46, %v1361_v44 }
 0x2ac   : > { %v1484_v48 = vpop.eup %1483  ;;  %v1364_v49 = vpop.f32.mrf.mxu0 }
 0x2ad   : > { %1163 = vst [vmem:[%s1868_s20 + $0x30] sm:$0xff] %v1484_v48  ;;  %v1119_v50 = vadd.f32 %v1363_v47, %v1857_v63 }
 0x2ae   : > { %v1365_v51 = vpop.f32.mrf.mxu0 }
 0x2af   : > { %1491 = vtanh.f32 %v1119_v50  ;;  %v1366_v52 = vadd.f32 %v1365_v51, %v1364_v49 }
 0x2b0   : > { %v1486_v53 = vpop.eup %1485  ;;  %v1367_v54 = vpop.f32.mrf.mxu0 }
 0x2b1   : > { %1164 = vst [vmem:[%s1868_s20 + $0x38] sm:$0xff] %v1486_v53  ;;  %v1122_v55 = vadd.f32 %v1366_v52, %v1857_v63 }
 0x2b2   : > { %v1368_v56 = vpop.f32.mrf.mxu0 }
 0x2b3   : > { %1493 = vtanh.f32 %v1122_v55  ;;  %v1369_v57 = vadd.f32 %v1368_v56, %v1367_v54 }
 0x2b4   : > { %v1488_v58 = vpop.eup %1487  ;;  %v1370_v59 = vpop.f32.mrf.mxu0 }
 0x2b5   : > { %1165 = vst [vmem:[%s1868_s20 + $0x40] sm:$0xff] %v1488_v58  ;;  %v1127_v60 = vadd.f32 %v1369_v57, %v1857_v63 }
 0x2b6   : > { %v1371_v61 = vpop.f32.mrf.mxu0 }
 0x2b7   : > { %1495 = vtanh.f32 %v1127_v60  ;;  %v1372_v62 = vadd.f32 %v1371_v61, %v1370_v59 }
 0x2b8   : > { %v1490_v0 = vpop.eup %1489  ;;  %v1373_v10 = vpop.f32.mrf.mxu0 }
 0x2b9   : > { %1166 = vst [vmem:[%s1868_s20 + $0x48] sm:$0xff] %v1490_v0  ;;  %v1130_v1 = vadd.f32 %v1372_v62, %v1857_v63 }
 0x2ba   : > { %v1374_v2 = vpop.f32.mrf.mxu0 }
 0x2bb   : > { %1497 = vtanh.f32 %v1130_v1  ;;  %v1375_v17 = vadd.f32 %v1374_v2, %v1373_v10 }
 0x2bc   : > { %v1492_v3 = vpop.eup %1491  ;;  %v1376_v4 = vpop.f32.mrf.mxu0 }
 0x2bd   : > { %1167 = vst [vmem:[%s1868_s20 + $0x50] sm:$0xff] %v1492_v3  ;;  %v1135_v5 = vadd.f32 %v1375_v17, %v1857_v63 }
 0x2be   : > { %v1377_v6 = vpop.f32.mrf.mxu0 }
 0x2bf   : > { %1499 = vtanh.f32 %v1135_v5  ;;  %v1378_v7 = vadd.f32 %v1377_v6, %v1376_v4 }
 0x2c0   : > { %v1494_v8 = vpop.eup %1493 }
 0x2c1   : > { %1168 = vst [vmem:[%s1868_s20 + $0x58] sm:$0xff] %v1494_v8  ;;  %v1138_v18 = vadd.f32 %v1378_v7, %v1857_v63 }
 0x2c3   : > { %1501 = vtanh.f32 %v1138_v18 }
 0x2c4   : > { %v1496_v9 = vpop.eup %1495 }
 0x2c5   : > { %1169 = vst [vmem:[%s1868_s20 + $0x60] sm:$0xff] %v1496_v9 }
 0x2c8   : > { %v1498_v11 = vpop.eup %1497 }
 0x2c9   : > { %1170 = vst [vmem:[%s1868_s20 + $0x68] sm:$0xff] %v1498_v11 }
 0x2cc   : > { %v1500_v15 = vpop.eup %1499 }
 0x2cd   : > { %1171 = vst [vmem:[%s1868_s20 + $0x70] sm:$0xff] %v1500_v15 }
 0x2d0   : > { %v1502_v16 = vpop.eup %1501 }
 0x2d1   : > { %1172 = vst [vmem:[%s1868_s20 + $0x78] sm:$0xff] %v1502_v16 }
 0x2d2 PF: > { %s18_s24 = sadd.s32 1, %s1539_s24  }
 0x2d3   : > { %p15_p1 = scmp.ge.s32.totalorder %s18_s24, 4  }
 0x2d5   :  { %17 = sbr.rel (!%p15_p1) target bundleno = 1 (0x1), region = 83 }
 0x2da   :  { %1195 = vsyncpa [#allocation3], 1 }
 0x2db   :  { %1197 = vsyncpa [#allocation3 + $0x1], 1 }

</bundles_post_ra>
